<compile_context>
chip_gen: v5e
topology: v5e:2x2
jax: 0.10.0
libtpu: 0.0.40
codegen_flags: <defaults>
</compile_context>

<pallas_src>
import functools

import jax
import jax.numpy as jnp
from jax.experimental import pallas as pl
from jax.experimental.pallas import tpu as pltpu
from jax.scipy.linalg import block_diag

HIGH = jax.lax.Precision.HIGHEST
MXU_DTYPE = jnp.bfloat16      # matmul operand dtype fed to the MXU (f32 accumulation)
OUT_LANE_PAD = 128            # pad final decode columns to a lane-dense width


def _pick_block_rows(m, max_rows=1024, min_grid=2):
    """Largest row block that divides m, is sublane-aligned (x8) and keeps >= min_grid
    grid steps (software pipelining + megacore sharding on v7x)."""
    upper = min(m // min_grid, max_rows)
    for bm in range(upper, 0, -1):
        if m % bm == 0 and bm % 8 == 0:
            return bm
    return m  # tiny fallback: a single full-size block (still legal)


def _dot_ref(a, w):
    """Reference-path dot with the same operand dtype semantics as the kernels."""
    prec = HIGH if w.dtype == jnp.float32 else None
    return jnp.dot(a.astype(w.dtype), w, precision=prec,
                   preferred_element_type=jnp.float32)


# ----------------------------------------------------------------------------
# Pallas kernel 1: y = x @ W + b   (fused 1x1x1 Conv3d pairs / nn.Linear hot path)
# ----------------------------------------------------------------------------
def _linear_kernel(x_ref, w_ref, b_ref, o_ref):
    x = x_ref[...].astype(w_ref.dtype)                 # bf16 operands, f32 accumulation
    o_ref[...] = jnp.dot(x, w_ref[...], preferred_element_type=jnp.float32) + b_ref[...]


def linear_op(x, w, b, use_pallas=True):
    m, k = x.shape
    n = w.shape[1]
    if not use_pallas:
        return _dot_ref(x, w) + b[None, :]
    bm = _pick_block_rows(m)
    return pl.pallas_call(
        _linear_kernel,
        out_shape=jax.ShapeDtypeStruct((m, n), jnp.float32),
        grid=(m // bm,),
        in_specs=[
            pl.BlockSpec((bm, k), lambda i: (i, 0)),
            pl.BlockSpec((k, n), lambda i: (0, 0)),
            pl.BlockSpec((1, n), lambda i: (0, 0)),
        ],
        out_specs=pl.BlockSpec((bm, n), lambda i: (i, 0)),
        compiler_params=pltpu.CompilerParams(dimension_semantics=("parallel",)),
    )(x, w, b.reshape(1, n))


# ----------------------------------------------------------------------------
# Pallas kernel 2: LayerNorm (eps=1e-5, biased variance like nn.LayerNorm), f32.
# Its output only feeds the JAX rFFT; the AFNO tail recomputes LN1 in-kernel.
# ----------------------------------------------------------------------------
def _layernorm_kernel(x_ref, g_ref, b_ref, o_ref):
    x = x_ref[...]
    mu = jnp.mean(x, axis=-1, keepdims=True)
    var = jnp.mean(jnp.square(x - mu), axis=-1, keepdims=True)
    o_ref[...] = (x - mu) * jax.lax.rsqrt(var + 1e-5) * g_ref[...] + b_ref[...]


def layernorm_op(x, g, b, use_pallas=True):
    m, c = x.shape
    if not use_pallas:
        mu = jnp.mean(x, axis=-1, keepdims=True)
        var = jnp.mean(jnp.square(x - mu), axis=-1, keepdims=True)
        return (x - mu) * jax.lax.rsqrt(var + 1e-5) * g[None, :] + b[None, :]
    bm = _pick_block_rows(m)
    return pl.pallas_call(
        _layernorm_kernel,
        out_shape=jax.ShapeDtypeStruct((m, c), jnp.float32),
        grid=(m // bm,),
        in_specs=[
            pl.BlockSpec((bm, c), lambda i: (i, 0)),
            pl.BlockSpec((1, c), lambda i: (0, 0)),
            pl.BlockSpec((1, c), lambda i: (0, 0)),
        ],
        out_specs=pl.BlockSpec((bm, c), lambda i: (i, 0)),
        compiler_params=pltpu.CompilerParams(dimension_semantics=("parallel",)),
    )(x, g.reshape(1, c), b.reshape(1, c))


# ----------------------------------------------------------------------------
# Pallas kernel 3: fused tail of AFNOBlock3d (double_skip = True).
#   xn  = LN1(x)                       (recomputed in-kernel; cheap VPU/XLU work,
#                                       saves one (M,C) HBM read of xn per block)
#   x2  = spectral_out + xn + x        (AFNO filter bias + block residual)
#   out = x2 + MLP(LN2(x2))
# ----------------------------------------------------------------------------
def _afno_tail_kernel(ys_ref, x_ref, g1_ref, b1_ref, g2_ref, b2_ref,
                      w1_ref, bm1_ref, w2_ref, bm2_ref, o_ref):
    x = x_ref[...]
    mu1 = jnp.mean(x, axis=-1, keepdims=True)
    var1 = jnp.mean(jnp.square(x - mu1), axis=-1, keepdims=True)
    xn = (x - mu1) * jax.lax.rsqrt(var1 + 1e-5) * g1_ref[...] + b1_ref[...]
    x2 = ys_ref[...] + xn + x
    mu2 = jnp.mean(x2, axis=-1, keepdims=True)
    var2 = jnp.mean(jnp.square(x2 - mu2), axis=-1, keepdims=True)
    xn2 = (x2 - mu2) * jax.lax.rsqrt(var2 + 1e-5) * g2_ref[...] + b2_ref[...]
    h = jnp.dot(xn2.astype(w1_ref.dtype), w1_ref[...],
                preferred_element_type=jnp.float32) + bm1_ref[...]
    # TODO(synk): torch nn.GELU default is exact erf GELU; tanh approximation used here
    # (Mosaic-safe, max abs diff ~1e-3 on unit-scale activations).
    h = jax.nn.gelu(h, approximate=True)
    y = jnp.dot(h.astype(w2_ref.dtype), w2_ref[...],
                preferred_element_type=jnp.float32) + bm2_ref[...]
    o_ref[...] = x2 + y


def afno_tail_op(ys, x, g1, b1, g2, b2, w1, bm1, w2, bm2, use_pallas=True):
    m, c = x.shape
    hdim = w1.shape[1]
    if not use_pallas:
        mu1 = jnp.mean(x, axis=-1, keepdims=True)
        var1 = jnp.mean(jnp.square(x - mu1), axis=-1, keepdims=True)
        xn = (x - mu1) * jax.lax.rsqrt(var1 + 1e-5) * g1[None, :] + b1[None, :]
        x2 = ys + xn + x
        mu2 = jnp.mean(x2, axis=-1, keepdims=True)
        var2 = jnp.mean(jnp.square(x2 - mu2), axis=-1, keepdims=True)
        xn2 = (x2 - mu2) * jax.lax.rsqrt(var2 + 1e-5) * g2[None, :] + b2[None, :]
        h = jax.nn.gelu(_dot_ref(xn2, w1) + bm1[None, :], approximate=True)
        return x2 + _dot_ref(h, w2) + bm2[None, :]
    bm = _pick_block_rows(m)
    return pl.pallas_call(
        _afno_tail_kernel,
        out_shape=jax.ShapeDtypeStruct((m, c), jnp.float32),
        grid=(m // bm,),
        in_specs=[
            pl.BlockSpec((bm, c), lambda i: (i, 0)),
            pl.BlockSpec((bm, c), lambda i: (i, 0)),
            pl.BlockSpec((1, c), lambda i: (0, 0)),
            pl.BlockSpec((1, c), lambda i: (0, 0)),
            pl.BlockSpec((1, c), lambda i: (0, 0)),
            pl.BlockSpec((1, c), lambda i: (0, 0)),
            pl.BlockSpec((c, hdim), lambda i: (0, 0)),
            pl.BlockSpec((1, hdim), lambda i: (0, 0)),
            pl.BlockSpec((hdim, c), lambda i: (0, 0)),
            pl.BlockSpec((1, c), lambda i: (0, 0)),
        ],
        out_specs=pl.BlockSpec((bm, c), lambda i: (i, 0)),
        compiler_params=pltpu.CompilerParams(dimension_semantics=("parallel",)),
    )(ys, x, g1.reshape(1, c), b1.reshape(1, c), g2.reshape(1, c), b2.reshape(1, c),
      w1, bm1.reshape(1, hdim), w2, bm2.reshape(1, c))


# ----------------------------------------------------------------------------
# Pallas kernel 4: AFNO spectral mixing, packed complex form.
#   input  xcat = [re || im] (M, 2C)
#   W      = [[Wr, Wi], [-Wi, Wr]]  so  xcat @ W = [re@Wr - im@Wi || re@Wi + im@Wr]
#   layer1 -> ReLU -> layer2 -> softshrink, all lane-dense (2C = 64 wide).
# ----------------------------------------------------------------------------
def _softshrink(v, lam):
    return jnp.where(v > lam, v - lam, jnp.where(v < -lam, v + lam, 0.0))


def _afno_spectral_kernel(x_ref, w1_ref, b1_ref, w2_ref, b2_ref, o_ref, *, lam):
    x = x_ref[...]
    h = jnp.dot(x.astype(w1_ref.dtype), w1_ref[...],
                preferred_element_type=jnp.float32) + b1_ref[...]
    h = jnp.maximum(h, 0.0)
    y = jnp.dot(h.astype(w2_ref.dtype), w2_ref[...],
                preferred_element_type=jnp.float32) + b2_ref[...]
    o_ref[...] = _softshrink(y, lam)


def afno_spectral_op(xcat, fp, use_pallas=True):
    lam = fp["lam"]  # python float (static)
    w1p, b1p, w2p, b2p = fp["w1p"], fp["b1p"], fp["w2p"], fp["b2p"]
    if not use_pallas:
        h = jnp.maximum(_dot_ref(xcat, w1p) + b1p[None, :], 0.0)
        return _softshrink(_dot_ref(h, w2p) + b2p[None, :], lam)
    m, c2 = xcat.shape
    bm = _pick_block_rows(m)
    kernel = functools.partial(_afno_spectral_kernel, lam=lam)
    return pl.pallas_call(
        kernel,
        out_shape=jax.ShapeDtypeStruct((m, c2), jnp.float32),
        grid=(m // bm,),
        in_specs=[
            pl.BlockSpec((bm, c2), lambda i: (i, 0)),
            pl.BlockSpec((c2, c2), lambda i: (0, 0)),
            pl.BlockSpec((1, c2), lambda i: (0, 0)),
            pl.BlockSpec((c2, c2), lambda i: (0, 0)),
            pl.BlockSpec((1, c2), lambda i: (0, 0)),
        ],
        out_specs=pl.BlockSpec((bm, c2), lambda i: (i, 0)),
        compiler_params=pltpu.CompilerParams(dimension_semantics=("parallel",)),
    )(xcat, w1p, b1p.reshape(1, c2), w2p, b2p.reshape(1, c2))


# ----------------------------------------------------------------------------
# Model glue (plain JAX: reshapes / FFT / parameter plumbing)
# ----------------------------------------------------------------------------
def afno3d_filter_spectral(xn5, fp, use_pallas=True):
    """Spectral part of AFNO3D (hard_thresholding_fraction=1, all modes kept).
    Returns the irFFT output WITHOUT the '+ bias' add (fused downstream)."""
    n, t, h, w, c = xn5.shape
    xf = jnp.fft.rfftn(xn5, axes=(1, 2, 3), norm="ortho")      # (N,T,H,Wf,C) complex64
    wf = xf.shape[3]
    xcat = jnp.concatenate([jnp.real(xf), jnp.imag(xf)], axis=-1).reshape(-1, 2 * c)
    ycat = afno_spectral_op(xcat, fp, use_pallas)
    yr, yi = ycat[:, :c], ycat[:, c:]
    yf = (yr + 1j * yi).reshape(n, t, h, wf, c)
    return jnp.fft.irfftn(yf, s=(t, h, w), axes=(1, 2, 3), norm="ortho")


def afno_block3d(x5, bp, use_pallas=True):
    """AFNOBlock3d (double_skip): LN1 -> AFNO filter -> (+LN1(x) + x) -> LN2 -> MLP -> +res."""
    shape = x5.shape
    c = shape[-1]
    xf = x5.reshape(-1, c)
    xn = layernorm_op(xf, bp["norm1_g"], bp["norm1_b"], use_pallas)       # feeds the FFT only
    ys = afno3d_filter_spectral(xn.reshape(shape), bp["filter"], use_pallas).reshape(-1, c)
    out = afno_tail_op(ys, xf, bp["norm1_g"], bp["norm1_b"], bp["norm2_g"], bp["norm2_b"],
                       bp["mlp_w1"], bp["mlp_b1"], bp["mlp_w2"], bp["mlp_b2"], use_pallas)
    return out.reshape(shape)


def afno_nowcast_net_forward(ep, inputs, use_pallas=True):
    """inputs: list of (x_i, t_relative_i) pairs, x_i in NCTHW (float32)."""
    xs = [xi for (xi, _t) in inputs]   # x, t_relative = zip(*x)
    zs = []
    for i, x in enumerate(xs):
        n, cin, t, h, w = x.shape
        # fused (autoencoder.encode ∘ proj) 1x1x1 convs as ONE channels-last matmul.
        # TODO(synk): real ldcast VAE encoder (strided convs) is an injected external module;
        # replaced by a synthetic 1x1x1-conv encoder returning (z,) -- semantics of encode()[0].
        xr = jnp.transpose(x, (0, 2, 3, 4, 1)).reshape(-1, cin)
        z = linear_op(xr, ep["in_fused_w"][i], ep["in_fused_b"][i], use_pallas)
        z = z.reshape(n, t, h, w, -1)                           # already channels-last
        for bp in ep["analysis"][i]:
            z = afno_block3d(z, bp, use_pallas)
        # TODO(synk): TemporalTransformer branch not implemented: this config has
        # input_patches == output_patches so use_temporal_transformer == False.
        zs.append(z)
    # FusionBlock3d with size_ratios=(1,), afno_fusion=False: Identity scaling, then sum(x).
    # TODO(synk): ConvTranspose3d upsampling (size_ratio > 1) and afno_fusion paths unused here.
    x = zs[0]
    for z in zs[1:]:
        x = x + z
    for bp in ep["forecast"]:
        x = afno_block3d(x, bp, use_pallas)
    # fused (out_proj ∘ output_autoencoder.decode), lane-padded columns -> slice -> permute.
    # TODO(synk): synthetic 1x1x1-conv stand-in for output_autoencoder.decode (external module).
    n, t, h, w, c = x.shape
    y = linear_op(x.reshape(-1, c), ep["out_fused_w"], ep["out_fused_b"], use_pallas)
    cout = ep["out_channels"]
    y = y[:, :cout].reshape(n, t, h, w, cout)
    return jnp.transpose(y, (0, 4, 1, 2, 3))                    # permute(0,4,1,2,3) -> NCTHW


# ----------------------------------------------------------------------------
# Deterministic parameter initialization (shapes follow the module __init__)
# ----------------------------------------------------------------------------
def init_afno_block_params(key, dim, num_blocks=8, mlp_ratio=4, sparsity_threshold=0.01):
    bs = dim // num_blocks
    ks = jax.random.split(key, 6)

    def blkdiag(w):  # (nb, bs_in, bs_out) -> (dim, dim) block-diagonal dense matrix
        return block_diag(*[w[b] for b in range(w.shape[0])])

    w1 = 0.02 * jax.random.normal(ks[0], (2, num_blocks, bs, bs), jnp.float32)
    b1 = 0.02 * jax.random.normal(ks[1], (2, num_blocks, bs), jnp.float32)
    w2 = 0.02 * jax.random.normal(ks[2], (2, num_blocks, bs, bs), jnp.float32)
    b2 = 0.02 * jax.random.normal(ks[3], (2, num_blocks, bs), jnp.float32)
    hidden = int(dim * mlp_ratio)
    return {
        "norm1_g": jnp.ones((dim,), jnp.float32),
        "norm1_b": jnp.zeros((dim,), jnp.float32),
        "filter": {
            "w1r": blkdiag(w1[0]), "w1i": blkdiag(w1[1]),
            "b1r": b1[0].reshape(-1), "b1i": b1[1].reshape(-1),
            "w2r": blkdiag(w2[0]), "w2i": blkdiag(w2[1]),
            "b2r": b2[0].reshape(-1), "b2i": b2[1].reshape(-1),
            "sparsity_threshold": float(sparsity_threshold),
        },
        "norm2_g": jnp.ones((dim,), jnp.float32),
        "norm2_b": jnp.zeros((dim,), jnp.float32),
        "mlp_w1": 0.02 * jax.random.normal(ks[4], (dim, hidden), jnp.float32),
        "mlp_b1": jnp.zeros((hidden,), jnp.float32),
        "mlp_w2": 0.02 * jax.random.normal(ks[5], (hidden, dim), jnp.float32),
        "mlp_b2": jnp.zeros((dim,), jnp.float32),
    }


def init_params(key, *, num_inputs=1, in_channels=4, hidden_width=16, embed_dim=32,
                embed_dim_out=None, analysis_depth=2, forecast_depth=2,
                num_blocks=8, mlp_ratio=4):
    if embed_dim_out is None:
        embed_dim_out = embed_dim
    keys = iter(jax.random.split(key, 64))
    p = {"autoencoder": [], "proj": [], "analysis": []}
    for _ in range(num_inputs):
        p["autoencoder"].append({
            "enc_w": 0.5 * jax.random.normal(next(keys), (in_channels, hidden_width), jnp.float32),
            "enc_b": 0.1 * jax.random.normal(next(keys), (hidden_width,), jnp.float32),
        })
        p["proj"].append({
            "w": 0.1 * jax.random.normal(next(keys), (hidden_width, embed_dim), jnp.float32),
            "b": 0.1 * jax.random.normal(next(keys), (embed_dim,), jnp.float32),
        })
        p["analysis"].append([
            init_afno_block_params(next(keys), embed_dim, num_blocks, mlp_ratio)
            for _ in range(analysis_depth)
        ])
    p["forecast"] = [init_afno_block_params(next(keys), embed_dim_out, num_blocks, mlp_ratio)
                     for _ in range(forecast_depth)]
    p["out_proj_w"] = 0.1 * jax.random.normal(next(keys), (embed_dim_out, hidden_width), jnp.float32)
    p["out_proj_b"] = 0.1 * jax.random.normal(next(keys), (hidden_width,), jnp.float32)
    p["output_autoencoder"] = {
        "dec_w": 0.5 * jax.random.normal(next(keys), (hidden_width, in_channels), jnp.float32),
        "dec_b": 0.1 * jax.random.normal(next(keys), (in_channels,), jnp.float32),
    }
    return p


# ----------------------------------------------------------------------------
# Parameter preparation: conv folding, complex packing, lane padding, MXU dtype
# ----------------------------------------------------------------------------
def _prep_afno_block(bp, mxu_dtype):
    f = bp["filter"]

    def pack_cplx(wr, wi):
        # [re || im] @ [[wr, wi], [-wi, wr]] == [re@wr - im@wi || re@wi + im@wr]
        return jnp.concatenate(
            [jnp.concatenate([wr, wi], axis=1),
             jnp.concatenate([-wi, wr], axis=1)], axis=0)

    return {
        "norm1_g": bp["norm1_g"], "norm1_b": bp["norm1_b"],
        "norm2_g": bp["norm2_g"], "norm2_b": bp["norm2_b"],
        "mlp_w1": bp["mlp_w1"].astype(mxu_dtype), "mlp_b1": bp["mlp_b1"],
        "mlp_w2": bp["mlp_w2"].astype(mxu_dtype), "mlp_b2": bp["mlp_b2"],
        "filter": {
            "w1p": pack_cplx(f["w1r"], f["w1i"]).astype(mxu_dtype),
            "b1p": jnp.concatenate([f["b1r"], f["b1i"]]),
            "w2p": pack_cplx(f["w2r"], f["w2i"]).astype(mxu_dtype),
            "b2p": jnp.concatenate([f["b2r"], f["b2i"]]),
            "lam": f["sparsity_threshold"],
        },
    }


def prepare_params(params, *, mxu_dtype=MXU_DTYPE, out_lane_pad=OUT_LANE_PAD):
    """Fold back-to-back 1x1x1 convs, pack the complex spectral weights, pad the decode
    output columns to a lane-dense width and cast MXU operands to `mxu_dtype`."""
    ep = {"in_fused_w": [], "in_fused_b": [], "analysis": []}
    for i in range(len(params["autoencoder"])):
        we, be = params["autoencoder"][i]["enc_w"], params["autoencoder"][i]["enc_b"]
        wp, bpj = params["proj"][i]["w"], params["proj"][i]["b"]
        w_fused = jnp.dot(we, wp, precision=HIGH)                  # (Cin, embed_dim)
        b_fused = jnp.dot(be, wp, precision=HIGH) + bpj
        ep["in_fused_w"].append(w_fused.astype(mxu_dtype))
        ep["in_fused_b"].append(b_fused.astype(jnp.float32))
        ep["analysis"].append([_prep_afno_block(b, mxu_dtype) for b in params["analysis"][i]])
    ep["forecast"] = [_prep_afno_block(b, mxu_dtype) for b in params["forecast"]]

    wo = jnp.dot(params["out_proj_w"], params["output_autoencoder"]["dec_w"], precision=HIGH)
    bo = (jnp.dot(params["out_proj_b"], params["output_autoencoder"]["dec_w"], precision=HIGH)
          + params["output_autoencoder"]["dec_b"])
    cout = wo.shape[1]
    pad = (-cout) % out_lane_pad
    ep["out_fused_w"] = jnp.pad(wo, ((0, 0), (0, pad))).astype(mxu_dtype)
    ep["out_fused_b"] = jnp.pad(bo, ((0, pad),)).astype(jnp.float32)
    ep["out_channels"] = cout
    return ep


if __name__ == "__main__":
    key = jax.random.PRNGKey(0)
    pkey, xkey = jax.random.split(key, 2)

    # small demo shapes (NCTHW)
    N, C_IN, T, H, W = 2, 4, 4, 16, 16
    raw_params = init_params(pkey, in_channels=C_IN)

    x = jax.random.normal(xkey, (N, C_IN, T, H, W), jnp.float32)
    t_rel = jnp.tile(jnp.arange(-T + 1, 1, dtype=jnp.float32)[None, :], (N, 1))  # unused (no temporal transformer)
    inputs = [(x, t_rel)]

    params_bf16 = prepare_params(raw_params, mxu_dtype=jnp.bfloat16)  # Pallas / MXU path
    params_f32 = prepare_params(raw_params, mxu_dtype=jnp.float32)    # full-precision golden

    out = jax.block_until_ready(afno_nowcast_net_forward(params_bf16, inputs, use_pallas=True))

    # pure-JAX reference with identical (bf16-operand, f32-accumulate) math: checks Pallas plumbing
    ref_same = jax.block_until_ready(afno_nowcast_net_forward(params_bf16, inputs, use_pallas=False))
    # full-f32 golden: sanity check that the bf16 MXU path stays a faithful forward pass
    ref_f32 = jax.block_until_ready(afno_nowcast_net_forward(params_f32, inputs, use_pallas=False))

    assert out.shape == (N, C_IN, T, H, W), out.shape
    assert bool(jnp.all(jnp.isfinite(out)))
    rel_same = float(jnp.max(jnp.abs(out - ref_same)) / (jnp.max(jnp.abs(ref_same)) + 1e-6))
    rel_f32 = float(jnp.max(jnp.abs(out - ref_f32)) / (jnp.max(jnp.abs(ref_f32)) + 1e-6))
    assert rel_same < 5e-3, f"Pallas vs matched-precision JAX reference: rel_err={rel_same}"
    assert rel_f32 < 5e-2, f"bf16-MXU path vs f32 reference: rel_err={rel_f32}"

    print("KERNEL_OK")
</pallas_src>

<mosaic_0001>
module attributes {stable_mosaic.version = 11 : i64} {
  func.func @_linear_kernel(%arg0: i32, %arg1: memref<1024x4xf32, #tpu.memory_space<vmem>>, %arg2: memref<4x32xbf16, #tpu.memory_space<vmem>>, %arg3: memref<1x32xf32, #tpu.memory_space<vmem>>, %arg4: memref<1024x32xf32, #tpu.memory_space<vmem>>) attributes {dimension_semantics = [#tpu.dimension_semantics<parallel>], iteration_bounds = array<i64: 2>, scalar_prefetch = 0 : i64, scratch_operands = 0 : i64, tpu.core_type = #tpu.core_type<tc>, window_params = [{transform_indices = @transform_0, window_bounds = array<i64: 1024, 4>}, {pipeline_mode = #tpu.pipeline_mode<synchronous>, transform_indices = @transform_1, window_bounds = array<i64: 4, 32>}, {pipeline_mode = #tpu.pipeline_mode<synchronous>, transform_indices = @transform_2, window_bounds = array<i64: 1, 32>}, {transform_indices = @transform_3, window_bounds = array<i64: 1024, 32>}]} {
    %c0 = arith.constant 0 : index
    %c0_0 = arith.constant 0 : index
    %0 = vector.load %arg1[%c0, %c0_0] : memref<1024x4xf32, #tpu.memory_space<vmem>>, vector<1024x4xf32>
    %1 = arith.truncf %0 : vector<1024x4xf32> to vector<1024x4xbf16>
    %c0_1 = arith.constant 0 : index
    %c0_2 = arith.constant 0 : index
    %2 = vector.load %arg2[%c0_1, %c0_2] : memref<4x32xbf16, #tpu.memory_space<vmem>>, vector<4x32xbf16>
    %cst = arith.constant dense<0.000000e+00> : vector<1024x32xf32>
    %3 = tpu.matmul %1, %2, %cst {dimension_numbers = #tpu.dot_dimension_numbers<[1], [0], [0], [1], [0, 0, 1, 1], [], []>} : vector<1024x4xbf16>, vector<4x32xbf16>, vector<1024x32xf32> -> vector<1024x32xf32>
    %c0_3 = arith.constant 0 : index
    %c0_4 = arith.constant 0 : index
    %4 = vector.load %arg3[%c0_3, %c0_4] : memref<1x32xf32, #tpu.memory_space<vmem>>, vector<1x32xf32>
    %5 = vector.broadcast %4 : vector<1x32xf32> to vector<1024x32xf32>
    %6 = arith.addf %3, %5 : vector<1024x32xf32>
    %c0_5 = arith.constant 0 : index
    %c0_6 = arith.constant 0 : index
    %7 = vector.load %arg4[%c0_5, %c0_6] : memref<1024x32xf32, #tpu.memory_space<vmem>>, vector<1024x32xf32>
    tpu.vector_store %arg4[%c0_5, %c0_6], %6 {strides = array<i32>} : memref<1024x32xf32, #tpu.memory_space<vmem>>, vector<1024x32xf32>,
    return
  }
  func.func @transform_0(%arg0: i32) -> (i32, i32) {
    %c0_i32 = arith.constant 0 : i32
    %c0_i32_0 = arith.constant 0 : i32
    return %arg0, %c0_i32 : i32, i32
  }
  func.func @transform_1(%arg0: i32) -> (i32, i32) {
    %c0_i32 = arith.constant 0 : i32
    %c0_i32_0 = arith.constant 0 : i32
    %c0_i32_1 = arith.constant 0 : i32
    return %c0_i32, %c0_i32_0 : i32, i32
  }
  func.func @transform_2(%arg0: i32) -> (i32, i32) {
    %c0_i32 = arith.constant 0 : i32
    %c0_i32_0 = arith.constant 0 : i32
    %c0_i32_1 = arith.constant 0 : i32
    return %c0_i32, %c0_i32_0 : i32, i32
  }
  func.func @transform_3(%arg0: i32) -> (i32, i32) {
    %c0_i32 = arith.constant 0 : i32
    %c0_i32_0 = arith.constant 0 : i32
    return %arg0, %c0_i32 : i32, i32
  }
}

</mosaic_0001>

<bundles_post_ra>
// kernel: tpu_custom_call.1
= control target key start
LH: loop header
LB: loop body
LE: loop exit
PB: predicated region body
PF: predicated region fallthrough
CT: control target
= control target key end

     0   :  { %s1199_s12 = smov 0   ;;  %s1813_s0 = inlined_call_operand.vmem [shape: f32[2048,4], index: 0, kind: input, shape index: {}]   ;;  %s1814_s1 = inlined_call_operand.vmem [shape: bf16[4,32], index: 1, kind: input, shape index: {}]   ;;  %s1815_s2 = inlined_call_operand.vmem [shape: f32[1,32], index: 2, kind: input, shape index: {}]   ;;  %s1816_s3 = inlined_call_operand.vmem [shape: f32[2048,32], index: 3, kind: output, shape index: {}]  }
   0x1 LB: > { %s1083_s13 = sadd.s32 4294967295, %s1177_s12   ;;  %p1087_p0 = scmp.ge.s32.totalorder %s1177_s12, 1  ;;  %s1177_s12 = sphi %s1199_s12, %s13_s12  }
   0x2   : > { %p138_p1 = scmp.lt.s32.totalorder %s1177_s12, 3 }
   0x4   : > { %p139_p2 = pnand %p1087_p0, %p138_p1 }
   0x5   : > { %s1088_s16 = sshll.u32 (!%p139_p2), %s1083_s13, 7 }
   0x6   : > { %142 = sbr.rel (%p139_p2) target bundleno = 403 (0x193), region = 32  ;;  %p163_p3 = scmp.lt.s32.totalorder (!%p139_p2), %s1088_s16, 255 }
   0xb   : > { %v367_v0 = vld [vmem:[%s1814_s1] sm:$0x3]  ;;  %vm565_vm0 = vcmask 1041408   ;;  %s1818_s16 = smov (!%p163_p3, %s1088_s16), 255  ;;  %vm372_vm1 = vcmask 31744   ;;  %vm898_vm2 = vcmask 261120  }
   0xc   : > { %v567_v1 = vsel %vm565_vm0, %v367_v0, 0  ;;  %s1089_s17 = sshll.u32 %s1818_s16, 3 }
   0xd   : > { %576 = vmatpush.bf16.msra.mxu0 %v567_v1  ;;  %1158 = vmatpush.bf16.msra.mxu1 %v567_v1  ;;  %s1218_s20 = scalar_lea.vmem %s1813_s0, %s1089_s17  ;;  %s1334_s25 = scalar_lea.vmem %s1816_s3, %s1089_s17 }
   0xe   : > { %1159 = vmatpush.bf16.msra.mxu2 %v567_v1  ;;  %1160 = vmatpush.bf16.msra.mxu3 %v567_v1  ;;  %v175_v2 = vld [vmem:[%s1218_s20] sm:$0xff]  ;;  %v176_v3 = vld [vmem:[%s1218_s20 + $0x8] sm:$0xff]  ;;  %v177_v14 = vld [vmem:[%s1218_s20 + $0x10] sm:$0xff] }
   0xf   : > { %v207_v4 = vld [vmem:[%s1218_s20 + $0x100] sm:$0xff]  ;;  %v303_v5 = vpack.c.bf16 %v176_v3, %v175_v2  ;;  %v208_v6 = vld [vmem:[%s1218_s20 + $0x108] sm:$0xff]  ;;  %v178_v15 = vld [vmem:[%s1218_s20 + $0x18] sm:$0xff] }
  0x10   : > { %v239_v7 = vld [vmem:[%s1218_s20 + $0x200] sm:$0xff]  ;;  %v240_v8 = vld [vmem:[%s1218_s20 + $0x208] sm:$0xff]  ;;  %v319_v9 = vpack.c.bf16 %v208_v6, %v207_v4  ;;  %v209_v16 = vld [vmem:[%s1218_s20 + $0x110] sm:$0xff]  ;;  %v304_v22 = vpack.c.bf16 %v178_v15, %v177_v14 }
  0x11   : > { %v335_v10 = vpack.c.bf16 %v240_v8, %v239_v7  ;;  %v271_v11 = vld [vmem:[%s1218_s20 + $0x300] sm:$0xff]  ;;  %v272_v12 = vld [vmem:[%s1218_s20 + $0x308] sm:$0xff]  ;;  %1092 = vmatmul.msk.bf16.vlgmr.msra.gmra.mxu0 %vm372_vm1, %v303_v5  ;;  %v210_v17 = vld [vmem:[%s1218_s20 + $0x118] sm:$0xff] }
  0x12   : > { %v351_v13 = vpack.c.bf16 %v272_v12, %v271_v11  ;;  %1108 = vmatmul.msk.bf16.vlgmr.msra.gmra.mxu1 %vm372_vm1, %v319_v9  ;;  %v241_v18 = vld [vmem:[%s1218_s20 + $0x210] sm:$0xff]  ;;  %v242_v19 = vld [vmem:[%s1218_s20 + $0x218] sm:$0xff]  ;;  %v320_v23 = vpack.c.bf16 %v210_v17, %v209_v16  ;;  %v179_v26 = vld [vmem:[%s1218_s20 + $0x20] sm:$0xff] }
  0x13   : > { %1124 = vmatmul.msk.bf16.vlgmr.msra.gmra.mxu2 %vm372_vm1, %v335_v10  ;;  %v273_v20 = vld [vmem:[%s1218_s20 + $0x310] sm:$0xff]  ;;  %v274_v21 = vld [vmem:[%s1218_s20 + $0x318] sm:$0xff]  ;;  %v336_v24 = vpack.c.bf16 %v242_v19, %v241_v18  ;;  %v180_v27 = vld [vmem:[%s1218_s20 + $0x28] sm:$0xff] }
  0x14   : > { %1140 = vmatmul.msk.bf16.vlgmr.msra.gmra.mxu3 %vm372_vm1, %v351_v13  ;;  %v352_v25 = vpack.c.bf16 %v274_v21, %v273_v20  ;;  %v211_v28 = vld [vmem:[%s1218_s20 + $0x120] sm:$0xff]  ;;  %v212_v29 = vld [vmem:[%s1218_s20 + $0x128] sm:$0xff]  ;;  %v305_v34 = vpack.c.bf16 %v180_v27, %v179_v26  ;;  %v181_v38 = vld [vmem:[%s1218_s20 + $0x30] sm:$0xff] }
  0x15   : > { %v243_v30 = vld [vmem:[%s1218_s20 + $0x220] sm:$0xff]  ;;  %v244_v31 = vld [vmem:[%s1218_s20 + $0x228] sm:$0xff]  ;;  %v321_v35 = vpack.c.bf16 %v212_v29, %v211_v28  ;;  %v182_v39 = vld [vmem:[%s1218_s20 + $0x38] sm:$0xff] }
  0x16   : > { %v275_v32 = vld [vmem:[%s1218_s20 + $0x320] sm:$0xff]  ;;  %v276_v33 = vld [vmem:[%s1218_s20 + $0x328] sm:$0xff]  ;;  %v337_v36 = vpack.c.bf16 %v244_v31, %v243_v30  ;;  %v213_v40 = vld [vmem:[%s1218_s20 + $0x130] sm:$0xff]  ;;  %v306_v46 = vpack.c.bf16 %v182_v39, %v181_v38 }
  0x17   : > { %v353_v37 = vpack.c.bf16 %v276_v33, %v275_v32  ;;  %v214_v41 = vld [vmem:[%s1218_s20 + $0x138] sm:$0xff]  ;;  %v245_v42 = vld [vmem:[%s1218_s20 + $0x230] sm:$0xff]  ;;  %v183_v50 = vld [vmem:[%s1218_s20 + $0x40] sm:$0xff] }
  0x18   : > { %v246_v43 = vld [vmem:[%s1218_s20 + $0x238] sm:$0xff]  ;;  %v277_v44 = vld [vmem:[%s1218_s20 + $0x330] sm:$0xff]  ;;  %v322_v47 = vpack.c.bf16 %v214_v41, %v213_v40  ;;  %v184_v51 = vld [vmem:[%s1218_s20 + $0x48] sm:$0xff] }
  0x19   : > { %v278_v45 = vld [vmem:[%s1218_s20 + $0x338] sm:$0xff]  ;;  %v338_v48 = vpack.c.bf16 %v246_v43, %v245_v42  ;;  %v215_v52 = vld [vmem:[%s1218_s20 + $0x140] sm:$0xff]  ;;  %v216_v53 = vld [vmem:[%s1218_s20 + $0x148] sm:$0xff]  ;;  %v307_v58 = vpack.c.bf16 %v184_v51, %v183_v50 }
  0x1a   : > { %v354_v49 = vpack.c.bf16 %v278_v45, %v277_v44  ;;  %v247_v54 = vld [vmem:[%s1218_s20 + $0x240] sm:$0xff]  ;;  %v248_v55 = vld [vmem:[%s1218_s20 + $0x248] sm:$0xff]  ;;  %v323_v59 = vpack.c.bf16 %v216_v53, %v215_v52  ;;  %v185_v62 = vld [vmem:[%s1218_s20 + $0x50] sm:$0xff] }
  0x1b   : > { %v279_v56 = vld [vmem:[%s1218_s20 + $0x340] sm:$0xff]  ;;  %v280_v57 = vld [vmem:[%s1218_s20 + $0x348] sm:$0xff]  ;;  %v339_v60 = vpack.c.bf16 %v248_v55, %v247_v54  ;;  %v186_v63 = vld [vmem:[%s1218_s20 + $0x58] sm:$0xff] }
  0x1c   : > { %v355_v61 = vpack.c.bf16 %v280_v57, %v279_v56  ;;  %v217_v0 = vld [vmem:[%s1218_s20 + $0x150] sm:$0xff]  ;;  %v218_v1 = vld [vmem:[%s1218_s20 + $0x158] sm:$0xff]  ;;  %v308_v6 = vpack.c.bf16 %v186_v63, %v185_v62  ;;  %v187_v10 = vld [vmem:[%s1218_s20 + $0x60] sm:$0xff] }
  0x1d   : > { %v249_v2 = vld [vmem:[%s1218_s20 + $0x250] sm:$0xff]  ;;  %v250_v3 = vld [vmem:[%s1218_s20 + $0x258] sm:$0xff]  ;;  %v324_v7 = vpack.c.bf16 %v218_v1, %v217_v0  ;;  %v188_v11 = vld [vmem:[%s1218_s20 + $0x68] sm:$0xff] }
  0x1e   : > { %v281_v4 = vld [vmem:[%s1218_s20 + $0x350] sm:$0xff]  ;;  %v282_v5 = vld [vmem:[%s1218_s20 + $0x358] sm:$0xff]  ;;  %v340_v8 = vpack.c.bf16 %v250_v3, %v249_v2  ;;  %v219_v12 = vld [vmem:[%s1218_s20 + $0x160] sm:$0xff]  ;;  %v309_v18 = vpack.c.bf16 %v188_v11, %v187_v10 }
  0x1f   : > { %v356_v9 = vpack.c.bf16 %v282_v5, %v281_v4  ;;  %v220_v13 = vld [vmem:[%s1218_s20 + $0x168] sm:$0xff]  ;;  %v251_v14 = vld [vmem:[%s1218_s20 + $0x260] sm:$0xff]  ;;  %v253_v26 = vld [vmem:[%s1218_s20 + $0x270] sm:$0xff] }
  0x20   : > { %v252_v15 = vld [vmem:[%s1218_s20 + $0x268] sm:$0xff]  ;;  %v283_v16 = vld [vmem:[%s1218_s20 + $0x360] sm:$0xff]  ;;  %v325_v19 = vpack.c.bf16 %v220_v13, %v219_v12  ;;  %v254_v27 = vld [vmem:[%s1218_s20 + $0x278] sm:$0xff] }
  0x21   : > { %1093 = vmatmul.msk.bf16.gmra.mxu0 %vm372_vm1, %v304_v22  ;;  %v284_v17 = vld [vmem:[%s1218_s20 + $0x368] sm:$0xff]  ;;  %v341_v20 = vpack.c.bf16 %v252_v15, %v251_v14  ;;  %v189_v22 = vld [vmem:[%s1218_s20 + $0x70] sm:$0xff]  ;;  %v286_v29 = vld [vmem:[%s1218_s20 + $0x378] sm:$0xff]  ;;  %v342_v32 = vpack.c.bf16 %v254_v27, %v253_v26 }
  0x22   : > { %1109 = vmatmul.msk.bf16.gmra.mxu1 %vm372_vm1, %v320_v23  ;;  %v357_v21 = vpack.c.bf16 %v284_v17, %v283_v16  ;;  %v190_v23 = vld [vmem:[%s1218_s20 + $0x78] sm:$0xff]  ;;  %v285_v28 = vld [vmem:[%s1218_s20 + $0x370] sm:$0xff]  ;;  %v224_v38 = vld [vmem:[%s1218_s20 + $0x188] sm:$0xff] }
  0x23   : > { %1125 = vmatmul.msk.bf16.gmra.mxu2 %vm372_vm1, %v336_v24  ;;  %v221_v24 = vld [vmem:[%s1218_s20 + $0x170] sm:$0xff]  ;;  %v310_v30 = vpack.c.bf16 %v190_v23, %v189_v22  ;;  %v358_v33 = vpack.c.bf16 %v286_v29, %v285_v28  ;;  %v255_v39 = vld [vmem:[%s1218_s20 + $0x280] sm:$0xff]  ;;  %v256_v40 = vld [vmem:[%s1218_s20 + $0x288] sm:$0xff] }
  0x24   : > { %1141 = vmatmul.msk.bf16.gmra.mxu3 %vm372_vm1, %v352_v25  ;;  %v222_v25 = vld [vmem:[%s1218_s20 + $0x178] sm:$0xff]  ;;  %v287_v41 = vld [vmem:[%s1218_s20 + $0x380] sm:$0xff]  ;;  %v288_v42 = vld [vmem:[%s1218_s20 + $0x388] sm:$0xff] }
  0x25   : > { %v326_v31 = vpack.c.bf16 %v222_v25, %v221_v24  ;;  %v226_v62 = vld [vmem:[%s1218_s20 + $0x198] sm:$0xff]  ;;  %v257_v63 = vld [vmem:[%s1218_s20 + $0x290] sm:$0xff]  ;;  %v195_v23 = vld [vmem:[%s1218_s20 + $0xa0] sm:$0xff] }
  0x26   : > { %v258_v0 = vld [vmem:[%s1218_s20 + $0x298] sm:$0xff]  ;;  %v289_v1 = vld [vmem:[%s1218_s20 + $0x390] sm:$0xff]  ;;  %v196_v24 = vld [vmem:[%s1218_s20 + $0xa8] sm:$0xff] }
  0x27   : > { %v290_v2 = vld [vmem:[%s1218_s20 + $0x398] sm:$0xff]  ;;  %v227_v25 = vld [vmem:[%s1218_s20 + $0x1a0] sm:$0xff]  ;;  %v228_v26 = vld [vmem:[%s1218_s20 + $0x1a8] sm:$0xff] }
  0x28   : > { %v360_v13 = vpack.c.bf16 %v290_v2, %v289_v1  ;;  %v259_v27 = vld [vmem:[%s1218_s20 + $0x2a0] sm:$0xff]  ;;  %v260_v28 = vld [vmem:[%s1218_s20 + $0x2a8] sm:$0xff] }
  0x29   : > { %v291_v29 = vld [vmem:[%s1218_s20 + $0x3a0] sm:$0xff] }
  0x31   : > { %1094 = vmatmul.msk.bf16.gmra.mxu0 %vm372_vm1, %v305_v34  ;;  %v1319_v34 = vld [vmem:[%s1815_s2] ss:$0 sm:$0xff] }
  0x32   : > { %1110 = vmatmul.msk.bf16.gmra.mxu1 %vm372_vm1, %v321_v35  ;;  %v191_v35 = vld [vmem:[%s1218_s20 + $0x80] sm:$0xff] }
  0x33   : > { %1126 = vmatmul.msk.bf16.gmra.mxu2 %vm372_vm1, %v337_v36  ;;  %v192_v36 = vld [vmem:[%s1218_s20 + $0x88] sm:$0xff] }
  0x34   : > { %1142 = vmatmul.msk.bf16.gmra.mxu3 %vm372_vm1, %v353_v37  ;;  %v223_v37 = vld [vmem:[%s1218_s20 + $0x180] sm:$0xff]  ;;  %v311_v43 = vpack.c.bf16 %v192_v36, %v191_v35 }
  0x35   : > { %v327_v45 = vpack.c.bf16 %v224_v38, %v223_v37  ;;  %v329_v37 = vpack.c.bf16 %v228_v26, %v227_v25  ;;  %v345_v38 = vpack.c.bf16 %v260_v28, %v259_v27 }
  0x41   : > { %1095 = vmatmul.msk.bf16.gmra.mxu0 %vm372_vm1, %v306_v46  ;;  %v343_v46 = vpack.c.bf16 %v256_v40, %v255_v39 }
  0x42   : > { %1111 = vmatmul.msk.bf16.gmra.mxu1 %vm372_vm1, %v322_v47 }
  0x43   : > { %1127 = vmatmul.msk.bf16.gmra.mxu2 %vm372_vm1, %v338_v48 }
  0x44   : > { %1143 = vmatmul.msk.bf16.gmra.mxu3 %vm372_vm1, %v354_v49  ;;  %v359_v49 = vpack.c.bf16 %v288_v42, %v287_v41 }
  0x51   : > { %1096 = vmatmul.msk.bf16.gmra.mxu0 %vm372_vm1, %v307_v58 }
  0x52   : > { %1112 = vmatmul.msk.bf16.gmra.mxu1 %vm372_vm1, %v323_v59  ;;  %v193_v59 = vld [vmem:[%s1218_s20 + $0x90] sm:$0xff] }
  0x53   : > { %1128 = vmatmul.msk.bf16.gmra.mxu2 %vm372_vm1, %v339_v60  ;;  %v194_v60 = vld [vmem:[%s1218_s20 + $0x98] sm:$0xff] }
  0x54   : > { %1144 = vmatmul.msk.bf16.gmra.mxu3 %vm372_vm1, %v355_v61  ;;  %v225_v61 = vld [vmem:[%s1218_s20 + $0x190] sm:$0xff]  ;;  %v312_v4 = vpack.c.bf16 %v194_v60, %v193_v59  ;;  %v294_v59 = vld [vmem:[%s1218_s20 + $0x3b8] sm:$0xff] }
  0x61   : > { %1097 = vmatmul.msk.bf16.gmra.mxu0 %vm372_vm1, %v308_v6 }
  0x62   : > { %1113 = vmatmul.msk.bf16.gmra.mxu1 %vm372_vm1, %v324_v7 }
  0x63   : > { %1129 = vmatmul.msk.bf16.gmra.mxu2 %vm372_vm1, %v340_v8  ;;  %v328_v8 = vpack.c.bf16 %v226_v62, %v225_v61 }
  0x64   : > { %1145 = vmatmul.msk.bf16.gmra.mxu3 %vm372_vm1, %v356_v9  ;;  %v344_v9 = vpack.c.bf16 %v258_v0, %v257_v63 }
  0x71   : > { %1098 = vmatmul.msk.bf16.gmra.mxu0 %vm372_vm1, %v309_v18 }
  0x72   : > { %1114 = vmatmul.msk.bf16.gmra.mxu1 %vm372_vm1, %v325_v19 }
  0x73   : > { %1130 = vmatmul.msk.bf16.gmra.mxu2 %vm372_vm1, %v341_v20 }
  0x74   : > { %1146 = vmatmul.msk.bf16.gmra.mxu3 %vm372_vm1, %v357_v21 }
  0x81   : > { %1099 = vmatmul.msk.bf16.gmra.mxu0 %vm372_vm1, %v310_v30  ;;  %v292_v30 = vld [vmem:[%s1218_s20 + $0x3a8] sm:$0xff] }
  0x82   : > { %1115 = vmatmul.msk.bf16.gmra.mxu1 %vm372_vm1, %v326_v31  ;;  %v361_v42 = vpack.c.bf16 %v292_v30, %v291_v29 }
  0x83   : > { %1131 = vmatmul.msk.bf16.gmra.mxu2 %vm372_vm1, %v342_v32  ;;  %v313_v32 = vpack.c.bf16 %v196_v24, %v195_v23  ;;  %v296_v23 = vld [vmem:[%s1218_s20 + $0x3c8] sm:$0xff] }
  0x84   : > { %1147 = vmatmul.msk.bf16.gmra.mxu3 %vm372_vm1, %v358_v33 }
  0x8e   : > { %v578_v44 = vpop.f32.mrf.mxu0 }
  0x8f   : > { %v579_v47 = vadd.f32 %v1319_v34, %v578_v44  ;;  %v658_v48 = vpop.f32.mrf.mxu1 }
  0x90   : > { %v659_v50 = vadd.f32 %v1319_v34, %v658_v48 }
  0x91   : > { %899 = vst.msk [vmem:[%s1334_s25] sm:$0xff] %vm898_vm2, %v579_v47  ;;  %1100 = vmatmul.msk.bf16.gmra.mxu0 %vm372_vm1, %v311_v43 }
  0x92   : > { %931 = vst.msk [vmem:[%s1334_s25 + $0x100] sm:$0xff] %vm898_vm2, %v659_v50  ;;  %1116 = vmatmul.msk.bf16.gmra.mxu1 %vm372_vm1, %v327_v45 }
  0x93   : > { %1132 = vmatmul.msk.bf16.gmra.mxu2 %vm372_vm1, %v343_v46 }
  0x94   : > { %1148 = vmatmul.msk.bf16.gmra.mxu3 %vm372_vm1, %v359_v49 }
  0x96   : > { %v738_v51 = vpop.f32.mrf.mxu2  ;;  %v580_v54 = vpop.f32.mrf.mxu0 }
  0x97   : > { %v739_v52 = vadd.f32 %v1319_v34, %v738_v51  ;;  %v818_v53 = vpop.f32.mrf.mxu3  ;;  %v581_v56 = vadd.f32 %v1319_v34, %v580_v54  ;;  %v660_v57 = vpop.f32.mrf.mxu1  ;;  %v229_v54 = vld [vmem:[%s1218_s20 + $0x1b0] sm:$0xff] }
  0x98   : > { %v819_v55 = vadd.f32 %v1319_v34, %v818_v53  ;;  %v661_v58 = vadd.f32 %v1319_v34, %v660_v57  ;;  %v198_v53 = vld [vmem:[%s1218_s20 + $0xb8] sm:$0xff] }
  0x99   : > { %963 = vst.msk [vmem:[%s1334_s25 + $0x200] sm:$0xff] %vm898_vm2, %v739_v52  ;;  %v197_v52 = vld [vmem:[%s1218_s20 + $0xb0] sm:$0xff]  ;;  %v262_v57 = vld [vmem:[%s1218_s20 + $0x2b8] sm:$0xff] }
  0x9a   : > { %995 = vst.msk [vmem:[%s1334_s25 + $0x300] sm:$0xff] %vm898_vm2, %v819_v55  ;;  %v230_v55 = vld [vmem:[%s1218_s20 + $0x1b8] sm:$0xff]  ;;  %v314_v61 = vpack.c.bf16 %v198_v53, %v197_v52 }
  0x9b   : > { %900 = vst.msk [vmem:[%s1334_s25 + $0x8] sm:$0xff] %vm898_vm2, %v581_v56  ;;  %v261_v56 = vld [vmem:[%s1218_s20 + $0x2b0] sm:$0xff]  ;;  %v330_v1 = vpack.c.bf16 %v230_v55, %v229_v54  ;;  %v298_v52 = vld [vmem:[%s1218_s20 + $0x3d8] sm:$0xff] }
  0x9c   : > { %932 = vst.msk [vmem:[%s1334_s25 + $0x108] sm:$0xff] %vm898_vm2, %v661_v58  ;;  %v293_v58 = vld [vmem:[%s1218_s20 + $0x3b0] sm:$0xff]  ;;  %v346_v2 = vpack.c.bf16 %v262_v57, %v261_v56 }
  0x9e   : > { %v740_v3 = vpop.f32.mrf.mxu2  ;;  %v583_v7 = vpop.f32.mrf.mxu0 }
  0x9f   : > { %v741_v5 = vadd.f32 %v1319_v34, %v740_v3  ;;  %v820_v6 = vpop.f32.mrf.mxu3  ;;  %v584_v11 = vadd.f32 %v1319_v34, %v583_v7  ;;  %v663_v12 = vpop.f32.mrf.mxu1 }
  0xa0   : > { %v821_v10 = vadd.f32 %v1319_v34, %v820_v6  ;;  %v664_v14 = vadd.f32 %v1319_v34, %v663_v12  ;;  %v362_v6 = vpack.c.bf16 %v294_v59, %v293_v58 }
  0xa1   : > { %964 = vst.msk [vmem:[%s1334_s25 + $0x208] sm:$0xff] %vm898_vm2, %v741_v5  ;;  %1101 = vmatmul.msk.bf16.gmra.mxu0 %vm372_vm1, %v312_v4 }
  0xa2   : > { %996 = vst.msk [vmem:[%s1334_s25 + $0x308] sm:$0xff] %vm898_vm2, %v821_v10  ;;  %1117 = vmatmul.msk.bf16.gmra.mxu1 %vm372_vm1, %v328_v8 }
  0xa3   : > { %901 = vst.msk [vmem:[%s1334_s25 + $0x10] sm:$0xff] %vm898_vm2, %v584_v11  ;;  %1133 = vmatmul.msk.bf16.gmra.mxu2 %vm372_vm1, %v344_v9 }
  0xa4   : > { %933 = vst.msk [vmem:[%s1334_s25 + $0x110] sm:$0xff] %vm898_vm2, %v664_v14  ;;  %1149 = vmatmul.msk.bf16.gmra.mxu3 %vm372_vm1, %v360_v13 }
  0xa6   : > { %v743_v15 = vpop.f32.mrf.mxu2  ;;  %v585_v18 = vpop.f32.mrf.mxu0 }
  0xa7   : > { %v744_v16 = vadd.f32 %v1319_v34, %v743_v15  ;;  %v823_v17 = vpop.f32.mrf.mxu3  ;;  %v586_v20 = vadd.f32 %v1319_v34, %v585_v18  ;;  %v665_v21 = vpop.f32.mrf.mxu1  ;;  %v231_v18 = vld [vmem:[%s1218_s20 + $0x1c0] sm:$0xff] }
  0xa8   : > { %v824_v19 = vadd.f32 %v1319_v34, %v823_v17  ;;  %v666_v22 = vadd.f32 %v1319_v34, %v665_v21  ;;  %v200_v17 = vld [vmem:[%s1218_s20 + $0xc8] sm:$0xff] }
  0xa9   : > { %965 = vst.msk [vmem:[%s1334_s25 + $0x210] sm:$0xff] %vm898_vm2, %v744_v16  ;;  %v199_v16 = vld [vmem:[%s1218_s20 + $0xc0] sm:$0xff]  ;;  %v264_v21 = vld [vmem:[%s1218_s20 + $0x2c8] sm:$0xff] }
  0xaa   : > { %997 = vst.msk [vmem:[%s1334_s25 + $0x310] sm:$0xff] %vm898_vm2, %v824_v19  ;;  %v232_v19 = vld [vmem:[%s1218_s20 + $0x1c8] sm:$0xff]  ;;  %v315_v25 = vpack.c.bf16 %v200_v17, %v199_v16 }
  0xab   : > { %902 = vst.msk [vmem:[%s1334_s25 + $0x18] sm:$0xff] %vm898_vm2, %v586_v20  ;;  %v263_v20 = vld [vmem:[%s1218_s20 + $0x2c0] sm:$0xff]  ;;  %v331_v29 = vpack.c.bf16 %v232_v19, %v231_v18  ;;  %v300_v16 = vld [vmem:[%s1218_s20 + $0x3e8] sm:$0xff] }
  0xac   : > { %934 = vst.msk [vmem:[%s1334_s25 + $0x118] sm:$0xff] %vm898_vm2, %v666_v22  ;;  %v295_v22 = vld [vmem:[%s1218_s20 + $0x3c0] sm:$0xff]  ;;  %v347_v30 = vpack.c.bf16 %v264_v21, %v263_v20 }
  0xae   : > { %v745_v31 = vpop.f32.mrf.mxu2  ;;  %v588_v36 = vpop.f32.mrf.mxu0 }
  0xaf   : > { %v746_v33 = vadd.f32 %v1319_v34, %v745_v31  ;;  %v825_v35 = vpop.f32.mrf.mxu3  ;;  %v589_v40 = vadd.f32 %v1319_v34, %v588_v36  ;;  %v668_v41 = vpop.f32.mrf.mxu1 }
  0xb0   : > { %v826_v39 = vadd.f32 %v1319_v34, %v825_v35  ;;  %v669_v43 = vadd.f32 %v1319_v34, %v668_v41  ;;  %v363_v35 = vpack.c.bf16 %v296_v23, %v295_v22 }
  0xb1   : > { %966 = vst.msk [vmem:[%s1334_s25 + $0x218] sm:$0xff] %vm898_vm2, %v746_v33  ;;  %1102 = vmatmul.msk.bf16.gmra.mxu0 %vm372_vm1, %v313_v32 }
  0xb2   : > { %998 = vst.msk [vmem:[%s1334_s25 + $0x318] sm:$0xff] %vm898_vm2, %v826_v39  ;;  %1118 = vmatmul.msk.bf16.gmra.mxu1 %vm372_vm1, %v329_v37 }
  0xb3   : > { %903 = vst.msk [vmem:[%s1334_s25 + $0x20] sm:$0xff] %vm898_vm2, %v589_v40  ;;  %1134 = vmatmul.msk.bf16.gmra.mxu2 %vm372_vm1, %v345_v38 }
  0xb4   : > { %935 = vst.msk [vmem:[%s1334_s25 + $0x120] sm:$0xff] %vm898_vm2, %v669_v43  ;;  %1150 = vmatmul.msk.bf16.gmra.mxu3 %vm372_vm1, %v361_v42 }
  0xb6   : > { %v748_v44 = vpop.f32.mrf.mxu2  ;;  %v590_v47 = vpop.f32.mrf.mxu0 }
  0xb7   : > { %v749_v45 = vadd.f32 %v1319_v34, %v748_v44  ;;  %v828_v46 = vpop.f32.mrf.mxu3  ;;  %v591_v49 = vadd.f32 %v1319_v34, %v590_v47  ;;  %v670_v50 = vpop.f32.mrf.mxu1  ;;  %v233_v47 = vld [vmem:[%s1218_s20 + $0x1d0] sm:$0xff] }
  0xb8   : > { %v829_v48 = vadd.f32 %v1319_v34, %v828_v46  ;;  %v671_v51 = vadd.f32 %v1319_v34, %v670_v50  ;;  %v202_v46 = vld [vmem:[%s1218_s20 + $0xd8] sm:$0xff] }
  0xb9   : > { %967 = vst.msk [vmem:[%s1334_s25 + $0x220] sm:$0xff] %vm898_vm2, %v749_v45  ;;  %v201_v45 = vld [vmem:[%s1218_s20 + $0xd0] sm:$0xff]  ;;  %v266_v50 = vld [vmem:[%s1218_s20 + $0x2d8] sm:$0xff] }
  0xba   : > { %999 = vst.msk [vmem:[%s1334_s25 + $0x320] sm:$0xff] %vm898_vm2, %v829_v48  ;;  %v234_v48 = vld [vmem:[%s1218_s20 + $0x1d8] sm:$0xff]  ;;  %v316_v54 = vpack.c.bf16 %v202_v46, %v201_v45 }
  0xbb   : > { %904 = vst.msk [vmem:[%s1334_s25 + $0x28] sm:$0xff] %vm898_vm2, %v591_v49  ;;  %v265_v49 = vld [vmem:[%s1218_s20 + $0x2d0] sm:$0xff]  ;;  %v332_v58 = vpack.c.bf16 %v234_v48, %v233_v47  ;;  %v302_v45 = vld [vmem:[%s1218_s20 + $0x3f8] sm:$0xff] }
  0xbc   : > { %936 = vst.msk [vmem:[%s1334_s25 + $0x128] sm:$0xff] %vm898_vm2, %v671_v51  ;;  %v297_v51 = vld [vmem:[%s1218_s20 + $0x3d0] sm:$0xff]  ;;  %v348_v59 = vpack.c.bf16 %v266_v50, %v265_v49 }
  0xbe   : > { %v750_v60 = vpop.f32.mrf.mxu2  ;;  %v593_v0 = vpop.f32.mrf.mxu0 }
  0xbf   : > { %v751_v62 = vadd.f32 %v1319_v34, %v750_v60  ;;  %v830_v63 = vpop.f32.mrf.mxu3  ;;  %v594_v4 = vadd.f32 %v1319_v34, %v593_v0  ;;  %v673_v5 = vpop.f32.mrf.mxu1 }
  0xc0   : > { %v831_v3 = vadd.f32 %v1319_v34, %v830_v63  ;;  %v674_v7 = vadd.f32 %v1319_v34, %v673_v5  ;;  %v364_v63 = vpack.c.bf16 %v298_v52, %v297_v51 }
  0xc1   : > { %968 = vst.msk [vmem:[%s1334_s25 + $0x228] sm:$0xff] %vm898_vm2, %v751_v62  ;;  %1103 = vmatmul.msk.bf16.gmra.mxu0 %vm372_vm1, %v314_v61 }
  0xc2   : > { %1000 = vst.msk [vmem:[%s1334_s25 + $0x328] sm:$0xff] %vm898_vm2, %v831_v3  ;;  %1119 = vmatmul.msk.bf16.gmra.mxu1 %vm372_vm1, %v330_v1 }
  0xc3   : > { %905 = vst.msk [vmem:[%s1334_s25 + $0x30] sm:$0xff] %vm898_vm2, %v594_v4  ;;  %1135 = vmatmul.msk.bf16.gmra.mxu2 %vm372_vm1, %v346_v2 }
  0xc4   : > { %937 = vst.msk [vmem:[%s1334_s25 + $0x130] sm:$0xff] %vm898_vm2, %v674_v7  ;;  %1151 = vmatmul.msk.bf16.gmra.mxu3 %vm372_vm1, %v362_v6 }
  0xc6   : > { %v753_v8 = vpop.f32.mrf.mxu2  ;;  %v595_v11 = vpop.f32.mrf.mxu0 }
  0xc7   : > { %v754_v9 = vadd.f32 %v1319_v34, %v753_v8  ;;  %v833_v10 = vpop.f32.mrf.mxu3  ;;  %v596_v13 = vadd.f32 %v1319_v34, %v595_v11  ;;  %v675_v14 = vpop.f32.mrf.mxu1  ;;  %v235_v11 = vld [vmem:[%s1218_s20 + $0x1e0] sm:$0xff] }
  0xc8   : > { %v834_v12 = vadd.f32 %v1319_v34, %v833_v10  ;;  %v676_v15 = vadd.f32 %v1319_v34, %v675_v14  ;;  %v204_v10 = vld [vmem:[%s1218_s20 + $0xe8] sm:$0xff] }
  0xc9   : > { %969 = vst.msk [vmem:[%s1334_s25 + $0x230] sm:$0xff] %vm898_vm2, %v754_v9  ;;  %v203_v9 = vld [vmem:[%s1218_s20 + $0xe0] sm:$0xff]  ;;  %v268_v14 = vld [vmem:[%s1218_s20 + $0x2e8] sm:$0xff] }
  0xca   : > { %1001 = vst.msk [vmem:[%s1334_s25 + $0x330] sm:$0xff] %vm898_vm2, %v834_v12  ;;  %v236_v12 = vld [vmem:[%s1218_s20 + $0x1e8] sm:$0xff]  ;;  %v317_v18 = vpack.c.bf16 %v204_v10, %v203_v9 }
  0xcb   : > { %906 = vst.msk [vmem:[%s1334_s25 + $0x38] sm:$0xff] %vm898_vm2, %v596_v13  ;;  %v267_v13 = vld [vmem:[%s1218_s20 + $0x2e0] sm:$0xff]  ;;  %v333_v22 = vpack.c.bf16 %v236_v12, %v235_v11 }
  0xcc   : > { %938 = vst.msk [vmem:[%s1334_s25 + $0x138] sm:$0xff] %vm898_vm2, %v676_v15  ;;  %v299_v15 = vld [vmem:[%s1218_s20 + $0x3e0] sm:$0xff]  ;;  %v349_v23 = vpack.c.bf16 %v268_v14, %v267_v13 }
  0xce   : > { %v755_v24 = vpop.f32.mrf.mxu2  ;;  %v598_v28 = vpop.f32.mrf.mxu0 }
  0xcf   : > { %v756_v26 = vadd.f32 %v1319_v34, %v755_v24  ;;  %v835_v27 = vpop.f32.mrf.mxu3  ;;  %v599_v32 = vadd.f32 %v1319_v34, %v598_v28  ;;  %v678_v33 = vpop.f32.mrf.mxu1 }
  0xd0   : > { %v836_v31 = vadd.f32 %v1319_v34, %v835_v27  ;;  %v679_v36 = vadd.f32 %v1319_v34, %v678_v33  ;;  %v365_v27 = vpack.c.bf16 %v300_v16, %v299_v15 }
  0xd1   : > { %970 = vst.msk [vmem:[%s1334_s25 + $0x238] sm:$0xff] %vm898_vm2, %v756_v26  ;;  %1104 = vmatmul.msk.bf16.gmra.mxu0 %vm372_vm1, %v315_v25 }
  0xd2   : > { %1002 = vst.msk [vmem:[%s1334_s25 + $0x338] sm:$0xff] %vm898_vm2, %v836_v31  ;;  %1120 = vmatmul.msk.bf16.gmra.mxu1 %vm372_vm1, %v331_v29 }
  0xd3   : > { %907 = vst.msk [vmem:[%s1334_s25 + $0x40] sm:$0xff] %vm898_vm2, %v599_v32  ;;  %1136 = vmatmul.msk.bf16.gmra.mxu2 %vm372_vm1, %v347_v30 }
  0xd4   : > { %939 = vst.msk [vmem:[%s1334_s25 + $0x140] sm:$0xff] %vm898_vm2, %v679_v36  ;;  %1152 = vmatmul.msk.bf16.gmra.mxu3 %vm372_vm1, %v363_v35 }
  0xd6   : > { %v758_v37 = vpop.f32.mrf.mxu2  ;;  %v600_v40 = vpop.f32.mrf.mxu0 }
  0xd7   : > { %v759_v38 = vadd.f32 %v1319_v34, %v758_v37  ;;  %v838_v39 = vpop.f32.mrf.mxu3  ;;  %v601_v42 = vadd.f32 %v1319_v34, %v600_v40  ;;  %v680_v43 = vpop.f32.mrf.mxu1  ;;  %v237_v40 = vld [vmem:[%s1218_s20 + $0x1f0] sm:$0xff] }
  0xd8   : > { %v839_v41 = vadd.f32 %v1319_v34, %v838_v39  ;;  %v681_v44 = vadd.f32 %v1319_v34, %v680_v43  ;;  %v206_v39 = vld [vmem:[%s1218_s20 + $0xf8] sm:$0xff] }
  0xd9   : > { %971 = vst.msk [vmem:[%s1334_s25 + $0x240] sm:$0xff] %vm898_vm2, %v759_v38  ;;  %v205_v38 = vld [vmem:[%s1218_s20 + $0xf0] sm:$0xff]  ;;  %v270_v43 = vld [vmem:[%s1218_s20 + $0x2f8] sm:$0xff] }
  0xda   : > { %1003 = vst.msk [vmem:[%s1334_s25 + $0x340] sm:$0xff] %vm898_vm2, %v839_v41  ;;  %v238_v41 = vld [vmem:[%s1218_s20 + $0x1f8] sm:$0xff]  ;;  %v318_v47 = vpack.c.bf16 %v206_v39, %v205_v38 }
  0xdb   : > { %908 = vst.msk [vmem:[%s1334_s25 + $0x48] sm:$0xff] %vm898_vm2, %v601_v42  ;;  %v269_v42 = vld [vmem:[%s1218_s20 + $0x2f0] sm:$0xff]  ;;  %v334_v51 = vpack.c.bf16 %v238_v41, %v237_v40 }
  0xdc   : > { %940 = vst.msk [vmem:[%s1334_s25 + $0x148] sm:$0xff] %vm898_vm2, %v681_v44  ;;  %v301_v44 = vld [vmem:[%s1218_s20 + $0x3f0] sm:$0xff]  ;;  %v350_v52 = vpack.c.bf16 %v270_v43, %v269_v42 }
  0xde   : > { %v760_v53 = vpop.f32.mrf.mxu2  ;;  %v603_v57 = vpop.f32.mrf.mxu0 }
  0xdf   : > { %v761_v55 = vadd.f32 %v1319_v34, %v760_v53  ;;  %v840_v56 = vpop.f32.mrf.mxu3  ;;  %v604_v61 = vadd.f32 %v1319_v34, %v603_v57  ;;  %v683_v62 = vpop.f32.mrf.mxu1 }
  0xe0   : > { %v841_v60 = vadd.f32 %v1319_v34, %v840_v56  ;;  %v684_v0 = vadd.f32 %v1319_v34, %v683_v62  ;;  %v366_v56 = vpack.c.bf16 %v302_v45, %v301_v44 }
  0xe1   : > { %972 = vst.msk [vmem:[%s1334_s25 + $0x248] sm:$0xff] %vm898_vm2, %v761_v55  ;;  %1105 = vmatmul.msk.bf16.gmra.mxu0 %vm372_vm1, %v316_v54 }
  0xe2   : > { %1004 = vst.msk [vmem:[%s1334_s25 + $0x348] sm:$0xff] %vm898_vm2, %v841_v60  ;;  %1121 = vmatmul.msk.bf16.gmra.mxu1 %vm372_vm1, %v332_v58 }
  0xe3   : > { %909 = vst.msk [vmem:[%s1334_s25 + $0x50] sm:$0xff] %vm898_vm2, %v604_v61  ;;  %1137 = vmatmul.msk.bf16.gmra.mxu2 %vm372_vm1, %v348_v59 }
  0xe4   : > { %941 = vst.msk [vmem:[%s1334_s25 + $0x150] sm:$0xff] %vm898_vm2, %v684_v0  ;;  %1153 = vmatmul.msk.bf16.gmra.mxu3 %vm372_vm1, %v364_v63 }
  0xe6   : > { %v763_v1 = vpop.f32.mrf.mxu2  ;;  %v605_v4 = vpop.f32.mrf.mxu0 }
  0xe7   : > { %v764_v2 = vadd.f32 %v1319_v34, %v763_v1  ;;  %v843_v3 = vpop.f32.mrf.mxu3  ;;  %v606_v6 = vadd.f32 %v1319_v34, %v605_v4  ;;  %v685_v7 = vpop.f32.mrf.mxu1 }
  0xe8   : > { %v844_v5 = vadd.f32 %v1319_v34, %v843_v3  ;;  %v686_v8 = vadd.f32 %v1319_v34, %v685_v7 }
  0xe9   : > { %973 = vst.msk [vmem:[%s1334_s25 + $0x250] sm:$0xff] %vm898_vm2, %v764_v2 }
  0xea   : > { %1005 = vst.msk [vmem:[%s1334_s25 + $0x350] sm:$0xff] %vm898_vm2, %v844_v5 }
  0xeb   : > { %910 = vst.msk [vmem:[%s1334_s25 + $0x58] sm:$0xff] %vm898_vm2, %v606_v6 }
  0xec   : > { %942 = vst.msk [vmem:[%s1334_s25 + $0x158] sm:$0xff] %vm898_vm2, %v686_v8 }
  0xee   : > { %v765_v17 = vpop.f32.mrf.mxu2  ;;  %v608_v21 = vpop.f32.mrf.mxu0 }
  0xef   : > { %v766_v19 = vadd.f32 %v1319_v34, %v765_v17  ;;  %v845_v20 = vpop.f32.mrf.mxu3  ;;  %v609_v25 = vadd.f32 %v1319_v34, %v608_v21  ;;  %v688_v26 = vpop.f32.mrf.mxu1 }
  0xf0   : > { %v846_v24 = vadd.f32 %v1319_v34, %v845_v20  ;;  %v689_v28 = vadd.f32 %v1319_v34, %v688_v26 }
  0xf1   : > { %974 = vst.msk [vmem:[%s1334_s25 + $0x258] sm:$0xff] %vm898_vm2, %v766_v19  ;;  %1106 = vmatmul.msk.bf16.gmra.mxu0 %vm372_vm1, %v317_v18 }
  0xf2   : > { %1006 = vst.msk [vmem:[%s1334_s25 + $0x358] sm:$0xff] %vm898_vm2, %v846_v24  ;;  %1122 = vmatmul.msk.bf16.gmra.mxu1 %vm372_vm1, %v333_v22 }
  0xf3   : > { %911 = vst.msk [vmem:[%s1334_s25 + $0x60] sm:$0xff] %vm898_vm2, %v609_v25  ;;  %1138 = vmatmul.msk.bf16.gmra.mxu2 %vm372_vm1, %v349_v23 }
  0xf4   : > { %943 = vst.msk [vmem:[%s1334_s25 + $0x160] sm:$0xff] %vm898_vm2, %v689_v28  ;;  %1154 = vmatmul.msk.bf16.gmra.mxu3 %vm372_vm1, %v365_v27 }
  0xf6   : > { %v768_v29 = vpop.f32.mrf.mxu2  ;;  %v610_v32 = vpop.f32.mrf.mxu0 }
  0xf7   : > { %v769_v30 = vadd.f32 %v1319_v34, %v768_v29  ;;  %v848_v31 = vpop.f32.mrf.mxu3  ;;  %v611_v35 = vadd.f32 %v1319_v34, %v610_v32  ;;  %v690_v36 = vpop.f32.mrf.mxu1 }
  0xf8   : > { %v849_v33 = vadd.f32 %v1319_v34, %v848_v31  ;;  %v691_v37 = vadd.f32 %v1319_v34, %v690_v36 }
  0xf9   : > { %975 = vst.msk [vmem:[%s1334_s25 + $0x260] sm:$0xff] %vm898_vm2, %v769_v30 }
  0xfa   : > { %1007 = vst.msk [vmem:[%s1334_s25 + $0x360] sm:$0xff] %vm898_vm2, %v849_v33 }
  0xfb   : > { %912 = vst.msk [vmem:[%s1334_s25 + $0x68] sm:$0xff] %vm898_vm2, %v611_v35 }
  0xfc   : > { %944 = vst.msk [vmem:[%s1334_s25 + $0x168] sm:$0xff] %vm898_vm2, %v691_v37 }
  0xfe   : > { %v770_v46 = vpop.f32.mrf.mxu2  ;;  %v613_v50 = vpop.f32.mrf.mxu0 }
  0xff   : > { %v771_v48 = vadd.f32 %v1319_v34, %v770_v46  ;;  %v850_v49 = vpop.f32.mrf.mxu3  ;;  %v614_v54 = vadd.f32 %v1319_v34, %v613_v50  ;;  %v693_v55 = vpop.f32.mrf.mxu1 }
 0x100   : > { %v851_v53 = vadd.f32 %v1319_v34, %v850_v49  ;;  %v694_v57 = vadd.f32 %v1319_v34, %v693_v55 }
 0x101   : > { %976 = vst.msk [vmem:[%s1334_s25 + $0x268] sm:$0xff] %vm898_vm2, %v771_v48  ;;  %1107 = vmatmul.msk.bf16.gmra.mxu0 %vm372_vm1, %v318_v47 }
 0x102   : > { %1008 = vst.msk [vmem:[%s1334_s25 + $0x368] sm:$0xff] %vm898_vm2, %v851_v53  ;;  %1123 = vmatmul.msk.bf16.gmra.mxu1 %vm372_vm1, %v334_v51 }
 0x103   : > { %913 = vst.msk [vmem:[%s1334_s25 + $0x70] sm:$0xff] %vm898_vm2, %v614_v54  ;;  %1139 = vmatmul.msk.bf16.gmra.mxu2 %vm372_vm1, %v350_v52 }
 0x104   : > { %945 = vst.msk [vmem:[%s1334_s25 + $0x170] sm:$0xff] %vm898_vm2, %v694_v57  ;;  %1155 = vmatmul.msk.bf16.gmra.mxu3 %vm372_vm1, %v366_v56 }
 0x106   : > { %v773_v58 = vpop.f32.mrf.mxu2  ;;  %v615_v61 = vpop.f32.mrf.mxu0 }
 0x107   : > { %v774_v59 = vadd.f32 %v1319_v34, %v773_v58  ;;  %v853_v60 = vpop.f32.mrf.mxu3  ;;  %v616_v63 = vadd.f32 %v1319_v34, %v615_v61  ;;  %v695_v0 = vpop.f32.mrf.mxu1 }
 0x108   : > { %v854_v62 = vadd.f32 %v1319_v34, %v853_v60  ;;  %v696_v1 = vadd.f32 %v1319_v34, %v695_v0 }
 0x109   : > { %977 = vst.msk [vmem:[%s1334_s25 + $0x270] sm:$0xff] %vm898_vm2, %v774_v59 }
 0x10a   : > { %1009 = vst.msk [vmem:[%s1334_s25 + $0x370] sm:$0xff] %vm898_vm2, %v854_v62 }
 0x10b   : > { %914 = vst.msk [vmem:[%s1334_s25 + $0x78] sm:$0xff] %vm898_vm2, %v616_v63 }
 0x10c   : > { %946 = vst.msk [vmem:[%s1334_s25 + $0x178] sm:$0xff] %vm898_vm2, %v696_v1 }
 0x10e   : > { %v775_v2 = vpop.f32.mrf.mxu2  ;;  %v618_v5 = vpop.f32.mrf.mxu0 }
 0x10f   : > { %v776_v3 = vadd.f32 %v1319_v34, %v775_v2  ;;  %v855_v4 = vpop.f32.mrf.mxu3  ;;  %v619_v7 = vadd.f32 %v1319_v34, %v618_v5  ;;  %v698_v8 = vpop.f32.mrf.mxu1 }
 0x110   : > { %v856_v6 = vadd.f32 %v1319_v34, %v855_v4  ;;  %v699_v9 = vadd.f32 %v1319_v34, %v698_v8 }
 0x111   : > { %978 = vst.msk [vmem:[%s1334_s25 + $0x278] sm:$0xff] %vm898_vm2, %v776_v3 }
 0x112   : > { %1010 = vst.msk [vmem:[%s1334_s25 + $0x378] sm:$0xff] %vm898_vm2, %v856_v6 }
 0x113   : > { %915 = vst.msk [vmem:[%s1334_s25 + $0x80] sm:$0xff] %vm898_vm2, %v619_v7 }
 0x114   : > { %947 = vst.msk [vmem:[%s1334_s25 + $0x180] sm:$0xff] %vm898_vm2, %v699_v9 }
 0x116   : > { %v778_v10 = vpop.f32.mrf.mxu2  ;;  %v620_v13 = vpop.f32.mrf.mxu0 }
 0x117   : > { %v779_v11 = vadd.f32 %v1319_v34, %v778_v10  ;;  %v858_v12 = vpop.f32.mrf.mxu3  ;;  %v621_v15 = vadd.f32 %v1319_v34, %v620_v13  ;;  %v700_v16 = vpop.f32.mrf.mxu1 }
 0x118   : > { %v859_v14 = vadd.f32 %v1319_v34, %v858_v12  ;;  %v701_v17 = vadd.f32 %v1319_v34, %v700_v16 }
 0x119   : > { %979 = vst.msk [vmem:[%s1334_s25 + $0x280] sm:$0xff] %vm898_vm2, %v779_v11 }
 0x11a   : > { %1011 = vst.msk [vmem:[%s1334_s25 + $0x380] sm:$0xff] %vm898_vm2, %v859_v14 }
 0x11b   : > { %916 = vst.msk [vmem:[%s1334_s25 + $0x88] sm:$0xff] %vm898_vm2, %v621_v15 }
 0x11c   : > { %948 = vst.msk [vmem:[%s1334_s25 + $0x188] sm:$0xff] %vm898_vm2, %v701_v17 }
 0x11e   : > { %v780_v18 = vpop.f32.mrf.mxu2  ;;  %v623_v21 = vpop.f32.mrf.mxu0 }
 0x11f   : > { %v781_v19 = vadd.f32 %v1319_v34, %v780_v18  ;;  %v860_v20 = vpop.f32.mrf.mxu3  ;;  %v624_v23 = vadd.f32 %v1319_v34, %v623_v21  ;;  %v703_v24 = vpop.f32.mrf.mxu1 }
 0x120   : > { %v861_v22 = vadd.f32 %v1319_v34, %v860_v20  ;;  %v704_v25 = vadd.f32 %v1319_v34, %v703_v24 }
 0x121   : > { %980 = vst.msk [vmem:[%s1334_s25 + $0x288] sm:$0xff] %vm898_vm2, %v781_v19 }
 0x122   : > { %1012 = vst.msk [vmem:[%s1334_s25 + $0x388] sm:$0xff] %vm898_vm2, %v861_v22 }
 0x123   : > { %917 = vst.msk [vmem:[%s1334_s25 + $0x90] sm:$0xff] %vm898_vm2, %v624_v23 }
 0x124   : > { %949 = vst.msk [vmem:[%s1334_s25 + $0x190] sm:$0xff] %vm898_vm2, %v704_v25 }
 0x126   : > { %v783_v26 = vpop.f32.mrf.mxu2  ;;  %v625_v29 = vpop.f32.mrf.mxu0 }
 0x127   : > { %v784_v27 = vadd.f32 %v1319_v34, %v783_v26  ;;  %v863_v28 = vpop.f32.mrf.mxu3  ;;  %v626_v31 = vadd.f32 %v1319_v34, %v625_v29  ;;  %v705_v32 = vpop.f32.mrf.mxu1 }
 0x128   : > { %v864_v30 = vadd.f32 %v1319_v34, %v863_v28  ;;  %v706_v33 = vadd.f32 %v1319_v34, %v705_v32 }
 0x129   : > { %981 = vst.msk [vmem:[%s1334_s25 + $0x290] sm:$0xff] %vm898_vm2, %v784_v27 }
 0x12a   : > { %1013 = vst.msk [vmem:[%s1334_s25 + $0x390] sm:$0xff] %vm898_vm2, %v864_v30 }
 0x12b   : > { %918 = vst.msk [vmem:[%s1334_s25 + $0x98] sm:$0xff] %vm898_vm2, %v626_v31 }
 0x12c   : > { %950 = vst.msk [vmem:[%s1334_s25 + $0x198] sm:$0xff] %vm898_vm2, %v706_v33 }
 0x12e   : > { %v785_v35 = vpop.f32.mrf.mxu2  ;;  %v628_v38 = vpop.f32.mrf.mxu0 }
 0x12f   : > { %v786_v36 = vadd.f32 %v1319_v34, %v785_v35  ;;  %v865_v37 = vpop.f32.mrf.mxu3  ;;  %v629_v40 = vadd.f32 %v1319_v34, %v628_v38  ;;  %v708_v41 = vpop.f32.mrf.mxu1 }
 0x130   : > { %v866_v39 = vadd.f32 %v1319_v34, %v865_v37  ;;  %v709_v42 = vadd.f32 %v1319_v34, %v708_v41 }
 0x131   : > { %982 = vst.msk [vmem:[%s1334_s25 + $0x298] sm:$0xff] %vm898_vm2, %v786_v36 }
 0x132   : > { %1014 = vst.msk [vmem:[%s1334_s25 + $0x398] sm:$0xff] %vm898_vm2, %v866_v39 }
 0x133   : > { %919 = vst.msk [vmem:[%s1334_s25 + $0xa0] sm:$0xff] %vm898_vm2, %v629_v40 }
 0x134   : > { %951 = vst.msk [vmem:[%s1334_s25 + $0x1a0] sm:$0xff] %vm898_vm2, %v709_v42 }
 0x136   : > { %v788_v43 = vpop.f32.mrf.mxu2  ;;  %v630_v46 = vpop.f32.mrf.mxu0 }
 0x137   : > { %v789_v44 = vadd.f32 %v1319_v34, %v788_v43  ;;  %v868_v45 = vpop.f32.mrf.mxu3  ;;  %v631_v48 = vadd.f32 %v1319_v34, %v630_v46  ;;  %v710_v49 = vpop.f32.mrf.mxu1 }
 0x138   : > { %v869_v47 = vadd.f32 %v1319_v34, %v868_v45  ;;  %v711_v50 = vadd.f32 %v1319_v34, %v710_v49 }
 0x139   : > { %983 = vst.msk [vmem:[%s1334_s25 + $0x2a0] sm:$0xff] %vm898_vm2, %v789_v44 }
 0x13a   : > { %1015 = vst.msk [vmem:[%s1334_s25 + $0x3a0] sm:$0xff] %vm898_vm2, %v869_v47 }
 0x13b   : > { %920 = vst.msk [vmem:[%s1334_s25 + $0xa8] sm:$0xff] %vm898_vm2, %v631_v48 }
 0x13c   : > { %952 = vst.msk [vmem:[%s1334_s25 + $0x1a8] sm:$0xff] %vm898_vm2, %v711_v50 }
 0x13e   : > { %v790_v51 = vpop.f32.mrf.mxu2  ;;  %v633_v54 = vpop.f32.mrf.mxu0 }
 0x13f   : > { %v791_v52 = vadd.f32 %v1319_v34, %v790_v51  ;;  %v870_v53 = vpop.f32.mrf.mxu3  ;;  %v634_v56 = vadd.f32 %v1319_v34, %v633_v54  ;;  %v713_v57 = vpop.f32.mrf.mxu1 }
 0x140   : > { %v871_v55 = vadd.f32 %v1319_v34, %v870_v53  ;;  %v714_v58 = vadd.f32 %v1319_v34, %v713_v57 }
 0x141   : > { %984 = vst.msk [vmem:[%s1334_s25 + $0x2a8] sm:$0xff] %vm898_vm2, %v791_v52 }
 0x142   : > { %1016 = vst.msk [vmem:[%s1334_s25 + $0x3a8] sm:$0xff] %vm898_vm2, %v871_v55 }
 0x143   : > { %921 = vst.msk [vmem:[%s1334_s25 + $0xb0] sm:$0xff] %vm898_vm2, %v634_v56 }
 0x144   : > { %953 = vst.msk [vmem:[%s1334_s25 + $0x1b0] sm:$0xff] %vm898_vm2, %v714_v58 }
 0x146   : > { %v793_v59 = vpop.f32.mrf.mxu2  ;;  %v635_v62 = vpop.f32.mrf.mxu0 }
 0x147   : > { %v794_v60 = vadd.f32 %v1319_v34, %v793_v59  ;;  %v873_v61 = vpop.f32.mrf.mxu3  ;;  %v636_v0 = vadd.f32 %v1319_v34, %v635_v62  ;;  %v715_v1 = vpop.f32.mrf.mxu1 }
 0x148   : > { %v874_v63 = vadd.f32 %v1319_v34, %v873_v61  ;;  %v716_v2 = vadd.f32 %v1319_v34, %v715_v1 }
 0x149   : > { %985 = vst.msk [vmem:[%s1334_s25 + $0x2b0] sm:$0xff] %vm898_vm2, %v794_v60 }
 0x14a   : > { %1017 = vst.msk [vmem:[%s1334_s25 + $0x3b0] sm:$0xff] %vm898_vm2, %v874_v63 }
 0x14b   : > { %922 = vst.msk [vmem:[%s1334_s25 + $0xb8] sm:$0xff] %vm898_vm2, %v636_v0 }
 0x14c   : > { %954 = vst.msk [vmem:[%s1334_s25 + $0x1b8] sm:$0xff] %vm898_vm2, %v716_v2 }
 0x14e   : > { %v795_v3 = vpop.f32.mrf.mxu2  ;;  %v638_v6 = vpop.f32.mrf.mxu0 }
 0x14f   : > { %v796_v4 = vadd.f32 %v1319_v34, %v795_v3  ;;  %v875_v5 = vpop.f32.mrf.mxu3  ;;  %v639_v8 = vadd.f32 %v1319_v34, %v638_v6  ;;  %v718_v9 = vpop.f32.mrf.mxu1 }
 0x150   : > { %v876_v7 = vadd.f32 %v1319_v34, %v875_v5  ;;  %v719_v10 = vadd.f32 %v1319_v34, %v718_v9 }
 0x151   : > { %986 = vst.msk [vmem:[%s1334_s25 + $0x2b8] sm:$0xff] %vm898_vm2, %v796_v4 }
 0x152   : > { %1018 = vst.msk [vmem:[%s1334_s25 + $0x3b8] sm:$0xff] %vm898_vm2, %v876_v7  ;;  %v1170_v7 = vld [vmem:[%s1815_s2] ss:$0 sm:$0xff] }
 0x153   : > { %923 = vst.msk [vmem:[%s1334_s25 + $0xc0] sm:$0xff] %vm898_vm2, %v639_v8 }
 0x154   : > { %955 = vst.msk [vmem:[%s1334_s25 + $0x1c0] sm:$0xff] %vm898_vm2, %v719_v10 }
 0x156   : > { %v798_v11 = vpop.f32.mrf.mxu2  ;;  %v640_v14 = vpop.f32.mrf.mxu0 }
 0x157   : > { %v799_v12 = vadd.f32 %v1319_v34, %v798_v11  ;;  %v878_v13 = vpop.f32.mrf.mxu3  ;;  %v641_v16 = vadd.f32 %v1319_v34, %v640_v14  ;;  %v720_v17 = vpop.f32.mrf.mxu1 }
 0x158   : > { %v879_v15 = vadd.f32 %v1319_v34, %v878_v13  ;;  %v721_v18 = vadd.f32 %v1319_v34, %v720_v17 }
 0x159   : > { %987 = vst.msk [vmem:[%s1334_s25 + $0x2c0] sm:$0xff] %vm898_vm2, %v799_v12 }
 0x15a   : > { %1019 = vst.msk [vmem:[%s1334_s25 + $0x3c0] sm:$0xff] %vm898_vm2, %v879_v15 }
 0x15b   : > { %924 = vst.msk [vmem:[%s1334_s25 + $0xc8] sm:$0xff] %vm898_vm2, %v641_v16 }
 0x15c   : > { %956 = vst.msk [vmem:[%s1334_s25 + $0x1c8] sm:$0xff] %vm898_vm2, %v721_v18 }
 0x15e   : > { %v800_v19 = vpop.f32.mrf.mxu2  ;;  %v643_v22 = vpop.f32.mrf.mxu0 }
 0x15f   : > { %v801_v20 = vadd.f32 %v1319_v34, %v800_v19  ;;  %v880_v21 = vpop.f32.mrf.mxu3  ;;  %v644_v24 = vadd.f32 %v1319_v34, %v643_v22  ;;  %v723_v25 = vpop.f32.mrf.mxu1 }
 0x160   : > { %v881_v23 = vadd.f32 %v1319_v34, %v880_v21  ;;  %v724_v26 = vadd.f32 %v1319_v34, %v723_v25 }
 0x161   : > { %988 = vst.msk [vmem:[%s1334_s25 + $0x2c8] sm:$0xff] %vm898_vm2, %v801_v20 }
 0x162   : > { %1020 = vst.msk [vmem:[%s1334_s25 + $0x3c8] sm:$0xff] %vm898_vm2, %v881_v23 }
 0x163   : > { %925 = vst.msk [vmem:[%s1334_s25 + $0xd0] sm:$0xff] %vm898_vm2, %v644_v24 }
 0x164   : > { %957 = vst.msk [vmem:[%s1334_s25 + $0x1d0] sm:$0xff] %vm898_vm2, %v724_v26 }
 0x166   : > { %v803_v27 = vpop.f32.mrf.mxu2  ;;  %v645_v30 = vpop.f32.mrf.mxu0 }
 0x167   : > { %v804_v28 = vadd.f32 %v1319_v34, %v803_v27  ;;  %v883_v29 = vpop.f32.mrf.mxu3  ;;  %v646_v32 = vadd.f32 %v1319_v34, %v645_v30  ;;  %v725_v33 = vpop.f32.mrf.mxu1 }
 0x168   : > { %v884_v31 = vadd.f32 %v1319_v34, %v883_v29  ;;  %v726_v35 = vadd.f32 %v1319_v34, %v725_v33 }
 0x169   : > { %989 = vst.msk [vmem:[%s1334_s25 + $0x2d0] sm:$0xff] %vm898_vm2, %v804_v28 }
 0x16a   : > { %1021 = vst.msk [vmem:[%s1334_s25 + $0x3d0] sm:$0xff] %vm898_vm2, %v884_v31 }
 0x16b   : > { %926 = vst.msk [vmem:[%s1334_s25 + $0xd8] sm:$0xff] %vm898_vm2, %v646_v32 }
 0x16c   : > { %958 = vst.msk [vmem:[%s1334_s25 + $0x1d8] sm:$0xff] %vm898_vm2, %v726_v35 }
 0x16e   : > { %v805_v36 = vpop.f32.mrf.mxu2  ;;  %v648_v39 = vpop.f32.mrf.mxu0 }
 0x16f   : > { %v806_v37 = vadd.f32 %v1319_v34, %v805_v36  ;;  %v885_v38 = vpop.f32.mrf.mxu3  ;;  %v649_v41 = vadd.f32 %v1319_v34, %v648_v39  ;;  %v728_v42 = vpop.f32.mrf.mxu1 }
 0x170   : > { %v886_v40 = vadd.f32 %v1319_v34, %v885_v38  ;;  %v729_v43 = vadd.f32 %v1319_v34, %v728_v42 }
 0x171   : > { %990 = vst.msk [vmem:[%s1334_s25 + $0x2d8] sm:$0xff] %vm898_vm2, %v806_v37 }
 0x172   : > { %1022 = vst.msk [vmem:[%s1334_s25 + $0x3d8] sm:$0xff] %vm898_vm2, %v886_v40 }
 0x173   : > { %927 = vst.msk [vmem:[%s1334_s25 + $0xe0] sm:$0xff] %vm898_vm2, %v649_v41 }
 0x174   : > { %959 = vst.msk [vmem:[%s1334_s25 + $0x1e0] sm:$0xff] %vm898_vm2, %v729_v43 }
 0x176   : > { %v808_v44 = vpop.f32.mrf.mxu2  ;;  %v650_v47 = vpop.f32.mrf.mxu0 }
 0x177   : > { %v809_v45 = vadd.f32 %v1319_v34, %v808_v44  ;;  %v888_v46 = vpop.f32.mrf.mxu3  ;;  %v651_v49 = vadd.f32 %v1319_v34, %v650_v47  ;;  %v730_v50 = vpop.f32.mrf.mxu1 }
 0x178   : > { %v889_v48 = vadd.f32 %v1319_v34, %v888_v46  ;;  %v731_v51 = vadd.f32 %v1319_v34, %v730_v50 }
 0x179   : > { %991 = vst.msk [vmem:[%s1334_s25 + $0x2e0] sm:$0xff] %vm898_vm2, %v809_v45 }
 0x17a   : > { %1023 = vst.msk [vmem:[%s1334_s25 + $0x3e0] sm:$0xff] %vm898_vm2, %v889_v48 }
 0x17b   : > { %928 = vst.msk [vmem:[%s1334_s25 + $0xe8] sm:$0xff] %vm898_vm2, %v651_v49 }
 0x17c   : > { %960 = vst.msk [vmem:[%s1334_s25 + $0x1e8] sm:$0xff] %vm898_vm2, %v731_v51 }
 0x17e   : > { %v810_v52 = vpop.f32.mrf.mxu2  ;;  %v653_v55 = vpop.f32.mrf.mxu0 }
 0x17f   : > { %v811_v53 = vadd.f32 %v1319_v34, %v810_v52  ;;  %v890_v54 = vpop.f32.mrf.mxu3  ;;  %v654_v57 = vadd.f32 %v1319_v34, %v653_v55  ;;  %v733_v58 = vpop.f32.mrf.mxu1 }
 0x180   : > { %v891_v56 = vadd.f32 %v1319_v34, %v890_v54  ;;  %v734_v59 = vadd.f32 %v1319_v34, %v733_v58 }
 0x181   : > { %992 = vst.msk [vmem:[%s1334_s25 + $0x2e8] sm:$0xff] %vm898_vm2, %v811_v53 }
 0x182   : > { %1024 = vst.msk [vmem:[%s1334_s25 + $0x3e8] sm:$0xff] %vm898_vm2, %v891_v56 }
 0x183   : > { %929 = vst.msk [vmem:[%s1334_s25 + $0xf0] sm:$0xff] %vm898_vm2, %v654_v57 }
 0x184   : > { %961 = vst.msk [vmem:[%s1334_s25 + $0x1f0] sm:$0xff] %vm898_vm2, %v734_v59 }
 0x186   : > { %v813_v60 = vpop.f32.mrf.mxu2  ;;  %v655_v63 = vpop.f32.mrf.mxu0 }
 0x187   : > { %v814_v61 = vadd.f32 %v1319_v34, %v813_v60  ;;  %v893_v62 = vpop.f32.mrf.mxu3  ;;  %v656_v1 = vadd.f32 %v1319_v34, %v655_v63  ;;  %v735_v2 = vpop.f32.mrf.mxu1 }
 0x188   : > { %v894_v0 = vadd.f32 %v1319_v34, %v893_v62  ;;  %v736_v3 = vadd.f32 %v1319_v34, %v735_v2 }
 0x189   : > { %993 = vst.msk [vmem:[%s1334_s25 + $0x2f0] sm:$0xff] %vm898_vm2, %v814_v61 }
 0x18a   : > { %1025 = vst.msk [vmem:[%s1334_s25 + $0x3f0] sm:$0xff] %vm898_vm2, %v894_v0 }
 0x18b   : > { %930 = vst.msk [vmem:[%s1334_s25 + $0xf8] sm:$0xff] %vm898_vm2, %v656_v1 }
 0x18c   : > { %962 = vst.msk [vmem:[%s1334_s25 + $0x1f8] sm:$0xff] %vm898_vm2, %v736_v3 }
 0x18e   : > { %v815_v4 = vpop.f32.mrf.mxu2 }
 0x18f   : > { %v816_v5 = vadd.f32 %v1319_v34, %v815_v4  ;;  %v895_v6 = vpop.f32.mrf.mxu3 }
 0x190   : > { %v896_v8 = vadd.f32 %v1170_v7, %v895_v6 }
 0x191   : > { %994 = vst.msk [vmem:[%s1334_s25 + $0x2f8] sm:$0xff] %vm898_vm2, %v816_v5 }
 0x192   : > { %1026 = vst.msk [vmem:[%s1334_s25 + $0x3f8] sm:$0xff] %vm898_vm2, %v896_v8 }
 0x193 PF: > { %s13_s12 = sadd.s32 1, %s1177_s12  }
 0x194   : > { %p10_p4 = scmp.ge.s32.totalorder %s13_s12, 4  }
 0x196   :  { %12 = sbr.rel (!%p10_p4) target bundleno = 1 (0x1), region = 62 }

</bundles_post_ra>
